<compile_context>
chip_gen: v7x
topology: tpu7x:2x2x1
jax: 0.10.0
libtpu: 0.0.40
codegen_flags: <defaults>
</compile_context>

<pallas_src>
import math

import jax
import jax.numpy as jnp
from jax.experimental import pallas as pl
from jax.experimental.pallas import tpu as pltpu


def _shared_linear_kernel(x_ref, w_ref, b_ref, o_ref):
    # x_ref: (tb, G*T*D)   -- lane-dense packed batch rows
    # w_ref: (G*T*D, G*T)  -- block-diagonal weights, resident
    # b_ref: (1, G*T)      -- tiled bias, resident
    # o_ref: (tb, G*T)     -- lane-dense packed output
    x = x_ref[...].astype(jnp.float32)
    w = w_ref[...].astype(jnp.float32)
    b = b_ref[...].astype(jnp.float32)
    s = jnp.dot(x, w, preferred_element_type=jnp.float32) + b   # MXU
    o_ref[...] = jax.nn.sigmoid(s).astype(o_ref.dtype)           # EUP


def _pick_row_tile(num_rows, max_tile=1024):
    """Row tile (in packed view rows) for the batch grid axis.

    - multiple of 8 (sublane constraint) unless it equals the full extent,
    - <= max_tile (keeps double-buffered VMEM well under v5e's 16 MiB scoped
      default and v7x's 32 MiB scoped / 64 MiB physical),
    - small enough that the grid has >= 2 steps when possible, so
      dimension_semantics=("parallel",) can shard across v7x's two TCs.
    """
    if num_rows <= 8:
        return num_rows                      # full extent block is allowed
    half = -(-num_rows // 2)                 # ceil(num_rows / 2)
    half = ((half + 7) // 8) * 8             # round up to multiple of 8
    return max(8, min(max_tile, half))


def reference_forward(x, weights, bias):
    # Pure-JAX reference mirroring the PyTorch forward.
    s = jnp.einsum(
        "btd,td->bt",
        x.astype(jnp.float32),
        weights.astype(jnp.float32),
    ) + bias.astype(jnp.float32)[None, :]
    return jax.nn.sigmoid(s)


def shared_linear_forward(x, weights, bias, *, min_elems_for_pallas=10_000,
                          max_row_tile=1024):
    """x: (B, T, D), weights: (T, D), bias: (T,)  ->  (B, T) f32.

    Accepts f32 or bf16 x; compute is always f32.
    """
    B, T, D = x.shape
    assert weights.shape == (T, D)
    assert bias.shape == (T,)

    # Small-shape escape hatch: launching Pallas is pure overhead here.
    if B * T * D < min_elems_for_pallas:
        return reference_forward(x, weights, bias)

    lane = 128
    # Pack G batch rows per view row so both the input row (G*T*D) and the
    # output row (G*T) are multiples of 128 lanes (dense, unmasked layout).
    g_in = math.lcm(T * D, lane) // (T * D)
    g_out = math.lcm(T, lane) // T
    G = math.lcm(g_in, g_out)
    if G > 512:
        # Degenerate T/D combination: packing factor too large to be useful.
        return reference_forward(x, weights, bias)

    # Pad B up to a multiple of G (padded rows are sliced off at the end).
    Bp = ((B + G - 1) // G) * G
    if Bp != B:
        x = jnp.pad(x, ((0, Bp - B), (0, 0), (0, 0)))
    R = Bp // G
    x2 = x.reshape(R, G * T * D)              # free reshape (contiguous)

    # Block-diagonal weights: W_big[g*T*D + t*D + d, g*T + t] = weights[t, d].
    w32 = weights.astype(jnp.float32)
    b32 = bias.astype(jnp.float32)
    eye_t = jnp.eye(T, dtype=jnp.float32)
    w_bd = (w32[:, :, None] * eye_t[:, None, :]).reshape(T * D, T)       # (T*D, T)
    eye_g = jnp.eye(G, dtype=jnp.float32)
    w_big = (eye_g[:, None, :, None] * w_bd[None, :, None, :]).reshape(
        G * T * D, G * T)                                                # (384, 128)
    bias_big = jnp.tile(b32, G).reshape(1, G * T)                        # (1, 128)

    tb = _pick_row_tile(R, max_tile=max_row_tile)
    grid = (pl.cdiv(R, tb),)

    out_packed = pl.pallas_call(
        _shared_linear_kernel,
        out_shape=jax.ShapeDtypeStruct((R, G * T), jnp.float32),
        grid=grid,
        in_specs=[
            pl.BlockSpec((tb, G * T * D), lambda i: (i, 0)),   # x tile over rows
            pl.BlockSpec((G * T * D, G * T), lambda i: (0, 0)),  # W resident
            pl.BlockSpec((1, G * T), lambda i: (0, 0)),           # bias resident
        ],
        out_specs=pl.BlockSpec((tb, G * T), lambda i: (i, 0)),
        compiler_params=pltpu.CompilerParams(
            dimension_semantics=("parallel",),
            vmem_limit_bytes=32 * 1024 * 1024,
        ),
    )(x2, w_big, bias_big)

    out = out_packed.reshape(Bp, T)           # free reshape (contiguous)
    return out[:B] if Bp != B else out


if __name__ == "__main__":
    # Small shapes consistent with the module: input_dim = o = 3, num_tickers = 4.
    B, T, D = 2, 4, 3

    key = jax.random.PRNGKey(0)
    kx, kw, kb = jax.random.split(key, 3)

    x = jax.random.normal(kx, (B, T, D), dtype=jnp.float32)
    # T independent nn.Linear(D, 1) layers stacked into (T, D) weights, (T,) biases.
    weights = jax.random.normal(kw, (T, D), dtype=jnp.float32) * 0.1
    bias = jax.random.normal(kb, (T,), dtype=jnp.float32) * 0.1

    ref_small = reference_forward(x, weights, bias)

    # 1) Force the Pallas kernel at the module's small shape (pads B -> 32).
    out_small = shared_linear_forward(x, weights, bias, min_elems_for_pallas=0)
    out_small = jax.block_until_ready(out_small)
    assert out_small.shape == (B, T)
    assert jnp.allclose(out_small, ref_small, atol=1e-5, rtol=1e-5), "small mismatch"

    # 2) Default path at the small shape exercises the XLA escape hatch.
    out_hatch = jax.block_until_ready(shared_linear_forward(x, weights, bias))
    assert jnp.allclose(out_hatch, ref_small, atol=1e-5, rtol=1e-5), "hatch mismatch"

    # 3) A modest batch that exercises the real Pallas path: padding, a
    #    multi-step grid (>=2 steps for v7x megacore) and a masked tail block.
    B2 = 4100
    x_big = jax.random.normal(jax.random.PRNGKey(1), (B2, T, D), dtype=jnp.float32)
    out_big = shared_linear_forward(x_big, weights, bias, min_elems_for_pallas=0)
    out_big = jax.block_until_ready(out_big)
    ref_big = reference_forward(x_big, weights, bias)
    assert out_big.shape == (B2, T)
    assert jnp.allclose(out_big, ref_big, atol=1e-5, rtol=1e-5), "big mismatch"

    print("KERNEL_OK")
</pallas_src>

<mosaic_0001>
module attributes {stable_mosaic.version = 11 : i64} {
  func.func @_shared_linear_kernel(%arg0: i32, %arg1: memref<1x384xf32, #tpu.memory_space<vmem>>, %arg2: memref<384x128xf32, #tpu.memory_space<vmem>>, %arg3: memref<1x128xf32, #tpu.memory_space<vmem>>, %arg4: memref<1x128xf32, #tpu.memory_space<vmem>>) attributes {dimension_semantics = [#tpu.dimension_semantics<parallel>], iteration_bounds = array<i64: 1>, scalar_prefetch = 0 : i64, scratch_operands = 0 : i64, tpu.core_type = #tpu.core_type<tc>, window_params = [{transform_indices = @transform_0, window_bounds = array<i64: 1, 384>}, {pipeline_mode = #tpu.pipeline_mode<synchronous>, transform_indices = @transform_1, window_bounds = array<i64: 384, 128>}, {pipeline_mode = #tpu.pipeline_mode<synchronous>, transform_indices = @transform_2, window_bounds = array<i64: 1, 128>}, {transform_indices = @transform_3, window_bounds = array<i64: 1, 128>}]} {
    %c0 = arith.constant 0 : index
    %c0_0 = arith.constant 0 : index
    %0 = vector.load %arg1[%c0, %c0_0] : memref<1x384xf32, #tpu.memory_space<vmem>>, vector<1x384xf32>
    %c0_1 = arith.constant 0 : index
    %c0_2 = arith.constant 0 : index
    %1 = vector.load %arg2[%c0_1, %c0_2] : memref<384x128xf32, #tpu.memory_space<vmem>>, vector<384x128xf32>
    %c0_3 = arith.constant 0 : index
    %c0_4 = arith.constant 0 : index
    %2 = vector.load %arg3[%c0_3, %c0_4] : memref<1x128xf32, #tpu.memory_space<vmem>>, vector<1x128xf32>
    %cst = arith.constant dense<0.000000e+00> : vector<1x128xf32>
    %3 = tpu.matmul %0, %1, %cst {dimension_numbers = #tpu.dot_dimension_numbers<[1], [0], [0], [1], [0, 0, 1, 1], [], []>} : vector<1x384xf32>, vector<384x128xf32>, vector<1x128xf32> -> vector<1x128xf32>
    %4 = arith.addf %3, %2 : vector<1x128xf32>
    %5 = arith.negf %4 : vector<1x128xf32>
    %6 = math.exp %5 : vector<1x128xf32>
    %cst_5 = arith.constant 1.000000e+00 : f32
    %7 = vector.broadcast %cst_5 : f32 to vector<1x128xf32>
    %8 = arith.addf %7, %6 : vector<1x128xf32>
    %9 = arith.divf %7, %8 : vector<1x128xf32>
    %c0_6 = arith.constant 0 : index
    %c0_7 = arith.constant 0 : index
    %10 = vector.load %arg4[%c0_6, %c0_7] : memref<1x128xf32, #tpu.memory_space<vmem>>, vector<1x128xf32>
    tpu.vector_store %arg4[%c0_6, %c0_7], %9 {strides = array<i32>} : memref<1x128xf32, #tpu.memory_space<vmem>>, vector<1x128xf32>,
    return
  }
  func.func @transform_0(%arg0: i32) -> (i32, i32) {
    %c0_i32 = arith.constant 0 : i32
    %c0_i32_0 = arith.constant 0 : i32
    return %arg0, %c0_i32 : i32, i32
  }
  func.func @transform_1(%arg0: i32) -> (i32, i32) {
    %c0_i32 = arith.constant 0 : i32
    %c0_i32_0 = arith.constant 0 : i32
    %c0_i32_1 = arith.constant 0 : i32
    return %c0_i32, %c0_i32_0 : i32, i32
  }
  func.func @transform_2(%arg0: i32) -> (i32, i32) {
    %c0_i32 = arith.constant 0 : i32
    %c0_i32_0 = arith.constant 0 : i32
    %c0_i32_1 = arith.constant 0 : i32
    return %c0_i32, %c0_i32_0 : i32, i32
  }
  func.func @transform_3(%arg0: i32) -> (i32, i32) {
    %c0_i32 = arith.constant 0 : i32
    %c0_i32_0 = arith.constant 0 : i32
    return %arg0, %c0_i32 : i32, i32
  }
}

</mosaic_0001>

<bundles_post_ra>
// kernel: tpu_custom_call.1
= control target key start
LH: loop header
LB: loop body
LE: loop exit
PB: predicated region body
PF: predicated region fallthrough
CT: control target
= control target key end

     0   :  { %8 = vsyncpa [#allocation3], 0  ;;  %s585_s0 = inlined_call_operand.hbm [shape: f32[1,384], index: 0, kind: input, shape index: {}]   ;;  %s586_s1 = inlined_call_operand.hbm [shape: f32[384,128], index: 1, kind: input, shape index: {}]   ;;  %s587_s2 = inlined_call_operand.vmem [shape: f32[1,128], index: 2, kind: input, shape index: {}]   ;;  %s588_s3 = inlined_call_operand.hbm [shape: f32[1,128], index: 3, kind: output, shape index: {}]  }
   0x1   :  { %9 = vsyncpa [#allocation6], 0 }
   0x2   :  { %10 = vsyncpa [#allocation4], 0  ;;  %s498_s12 = smov [#allocation2]   ;;  %s499_s14 = smov [#allocation5]  }
   0x3   :  { %s17_s13 = sshll.u32 %s498_s12, 4  ;;  %s26_s15 = sshll.u32 %s499_s14, 4  ;;  %s18_s13 = int_to_ptr.vmem [resolvable:$true] %s17_s13  ;;  %s526_s15 = int_to_ptr.vmem [resolvable:$true] %s26_s15 }
   0x4   :  { %s426_s18 = scalar_lea.hbm %s585_s0, 48 }
   0x5   :  { %p427_p0 = scmp.ne.s32.totalorder %s585_s0, %s426_s18  ;;  %p430_p1 = scmp.lt.u32.totalorder %s426_s18, %s585_s0 }
   0x7   :  { %p432_p2 = pnand %p430_p1, %p427_p0 }
   0x9   :  { %435 = shalt.err (!%p432_p2)
}
   0xa   :  { %s436_s23 = scalar_lea.vmem %s18_s13, 48  ;;  %s440_s24 = scalar_lea.vmem %s18_s13, 64 }
   0xb   :  { %p437_p3 = scmp.ne.s32.totalorder %s18_s13, %s436_s23  ;;  %p441_p4 = scmp.lt.s32.totalorder %s18_s13, %s18_s13 }
   0xc   :  { %p442_p5 = scmp.lt.s32.totalorder %s440_s24, %s436_s23 }
   0xe   :  { %p443_p6 = por %p442_p5, %p441_p4 }
  0x10   :  { %p444_p7 = pnand %p443_p6, %p437_p3 }
  0x12   :  { %447 = shalt.err (!%p444_p7)
}
  0x13   :  { %20 = dma.hbm_to_vmem [thread:$0]  %s585_s0, 48, %s18_s13, [#allocation3]  }
  0x14   :  { %s448_s29 = scalar_lea.hbm %s586_s1, 6144 }
  0x15   :  { %p449_p8 = scmp.ne.s32.totalorder %s586_s1, %s448_s29  ;;  %p452_p9 = scmp.lt.u32.totalorder %s448_s29, %s586_s1 }
  0x17   :  { %p454_p10 = pnand %p452_p9, %p449_p8 }
  0x19   :  { %457 = shalt.err (!%p454_p10)
}
  0x1a   :  { %s458_s7 = scalar_lea.vmem %s526_s15, 6144  ;;  %p463_p12 = scmp.lt.s32.totalorder %s526_s15, %s526_s15 }
  0x1b   :  { %p459_p11 = scmp.ne.s32.totalorder %s526_s15, %s458_s7  ;;  %p464_p13 = scmp.lt.s32.totalorder %s458_s7, %s458_s7 }
  0x1d   :  { %p465_p0 = por %p464_p13, %p463_p12 }
  0x1f   :  { %p466_p1 = pnand %p465_p0, %p459_p11 }
  0x21   :  { %469 = shalt.err (!%p466_p1)
}
  0x22   :  { %s500_s0 = smov 128   ;;  %s501_s8 = smov 8  }
  0x23   :  { %32 = dma.hbm_to_vmem [thread:$0]  %s586_s1, 6144, %s526_s15, [#allocation6], %s500_s0, %s500_s0, %s501_s8  }
  0x24   :  { %492 = dma.done.wait [#allocation3], 48  }
  0x25   :  { %493 = vsyncadd [#allocation3], 4294967248 }
  0x26   :  { %494 = dma.done.wait [#allocation6], 6144  }
  0x27   :  { %495 = vsyncadd [#allocation6], 4294961152  ;;  %v502_v0 = vmov 0.0|0.0   ;;  %vm503_vm0 = vmmov 0   ;;  %v504_v1 = vmov 0.0   ;;  %v58_v2 = vld [vmem:[#allocation5 + $0x80] sm:$0xff]  ;;  %v92_v20 = vlaneseq }
  0x28   :  { %390 = vmatprep.subr.bf16.mxu1 %v502_v0  ;;  %355 = vmatprep.mubr.msk.f32.mxu1 %vm503_vm0, %v504_v1  ;;  %v59_v3 = vld [vmem:[#allocation5 + $0x88] sm:$0xff]  ;;  %v42_v4 = vld [vmem:[#allocation5] sm:$0xff]  ;;  %v60_v7 = vld [vmem:[#allocation5 + $0x90] sm:$0xff]  ;;  %s505_s12 = smov [#allocation7]  }
  0x29   :  { %v358_v5 = vpack.c.bf16 %v59_v3, %v58_v2  ;;  %v43_v6 = vld [vmem:[#allocation5 + $0x8] sm:$0xff]  ;;  %v61_v8 = vld [vmem:[#allocation5 + $0x98] sm:$0xff]  ;;  %v44_v11 = vld [vmem:[#allocation5 + $0x10] sm:$0xff]  ;;  %v559_v31 = vshrl.u32 %v92_v20, 7  ;;  %s260_s13 = sshll.u32 %s505_s12, 4  ;;  %s261_s13 = int_to_ptr.vmem [resolvable:$true] %s260_s13 }
  0x2a   :  { %v360_v9 = vpack.c.bf16 %v43_v6, %v42_v4  ;;  %v362_v10 = vpack.c.bf16 %v61_v8, %v60_v7  ;;  %v45_v12 = vld [vmem:[#allocation5 + $0x18] sm:$0xff]  ;;  %v74_v13 = vld [vmem:[#allocation5 + $0x100] sm:$0xff]  ;;  %v75_v14 = vld [vmem:[#allocation5 + $0x108] sm:$0xff]  ;;  %s470_s14 = scalar_lea.vmem %s261_s13, 16  ;;  %s474_s15 = scalar_lea.vmem %s261_s13, 32 }
  0x2b   :  { %359 = vmatprep.subr.bf16.mxu0 %v358_v5  ;;  %v62_v15 = vld [vmem:[#allocation5 + $0xa0] sm:$0xff]  ;;  %v63_v16 = vld [vmem:[#allocation5 + $0xa8] sm:$0xff]  ;;  %v364_v17 = vpack.c.bf16 %v45_v12, %v44_v11  ;;  %v391_v18 = vpack.c.bf16 %v75_v14, %v74_v13  ;;  %v76_v19 = vld [vmem:[#allocation5 + $0x110] sm:$0xff]  ;;  %v98_v41 = vsub.s32 1, %v559_v31  ;;  %v94_v12 = vsub.s32 0, %v559_v31  ;;  %p471_p2 = scmp.ne.s32.totalorder %s261_s13, %s470_s14  ;;  %p475_p3 = scmp.lt.s32.totalorder %s261_s13, %s261_s13 }
  0x2c   :  { %361 = vmatpush3.bf16.msra.mxu0 %v360_v9  ;;  %v366_v21 = vpack.c.bf16 %v63_v16, %v62_v15  ;;  %v46_v22 = vld [vmem:[#allocation5 + $0x20] sm:$0xff]  ;;  %v47_v23 = vld [vmem:[#allocation5 + $0x28] sm:$0xff]  ;;  %v77_v24 = vld [vmem:[#allocation5 + $0x118] sm:$0xff]  ;;  %v102_v16 = vsub.s32 2, %v559_v31  ;;  %p476_p4 = scmp.lt.s32.totalorder %s474_s15, %s470_s14 }
  0x2d   :  { %363 = vmatprep.subr.bf16.mxu0 %v362_v10  ;;  %392 = vmatpush3.bf16.msra.mxu1 %v391_v18  ;;  %v394_v25 = vpack.c.bf16 %v77_v24, %v76_v19  ;;  %v64_v26 = vld [vmem:[#allocation5 + $0xb0] sm:$0xff]  ;;  %v65_v27 = vld [vmem:[#allocation5 + $0xb8] sm:$0xff]  ;;  %v78_v28 = vld [vmem:[#allocation5 + $0x120] sm:$0xff]  ;;  %v368_v30 = vpack.c.bf16 %v47_v23, %v46_v22 }
  0x2e   :  { %393 = vmatprep.subr.bf16.mxu1 %v502_v0  ;;  %v79_v29 = vld [vmem:[#allocation5 + $0x128] sm:$0xff]  ;;  %v370_v32 = vpack.c.bf16 %v65_v27, %v64_v26  ;;  %v48_v33 = vld [vmem:[#allocation5 + $0x30] sm:$0xff]  ;;  %v49_v34 = vld [vmem:[#allocation5 + $0x38] sm:$0xff]  ;;  %p477_p5 = por %p476_p4, %p475_p3 }
  0x2f   :  { %v397_v35 = vpack.c.bf16 %v79_v29, %v78_v28  ;;  %v66_v36 = vld [vmem:[#allocation5 + $0xc0] sm:$0xff]  ;;  %v67_v37 = vld [vmem:[#allocation5 + $0xc8] sm:$0xff]  ;;  %v80_v38 = vld [vmem:[#allocation5 + $0x130] sm:$0xff]  ;;  %v372_v40 = vpack.c.bf16 %v49_v34, %v48_v33 }
  0x30   :  { %365 = vmatpush3.bf16.msra.mxu0 %v364_v17  ;;  %v81_v39 = vld [vmem:[#allocation5 + $0x138] sm:$0xff]  ;;  %v374_v42 = vpack.c.bf16 %v67_v37, %v66_v36  ;;  %v50_v43 = vld [vmem:[#allocation5 + $0x40] sm:$0xff]  ;;  %v51_v44 = vld [vmem:[#allocation5 + $0x48] sm:$0xff]  ;;  %p478_p6 = pnand %p477_p5, %p471_p2 }
  0x31   :  { %367 = vmatprep.subr.bf16.mxu0 %v366_v21  ;;  %395 = vmatpush3.bf16.msra.mxu1 %v394_v25  ;;  %v400_v45 = vpack.c.bf16 %v81_v39, %v80_v38  ;;  %v68_v46 = vld [vmem:[#allocation5 + $0xd0] sm:$0xff]  ;;  %v69_v47 = vld [vmem:[#allocation5 + $0xd8] sm:$0xff]  ;;  %v82_v48 = vld [vmem:[#allocation5 + $0x140] sm:$0xff]  ;;  %v376_v51 = vpack.c.bf16 %v51_v44, %v50_v43 }
  0x32   :  { %396 = vmatprep.subr.bf16.mxu1 %v502_v0  ;;  %v83_v49 = vld [vmem:[#allocation5 + $0x148] sm:$0xff]  ;;  %v41_v50 = vld [vmem:[#allocation2] sm:$0x7]  ;;  %v378_v53 = vpack.c.bf16 %v69_v47, %v68_v46  ;;  %v52_v54 = vld [vmem:[#allocation5 + $0x50] sm:$0xff] }
  0x33   :  { %v99_v52 = vrot.slane %v41_v50, %v98_v41  ;;  %v53_v55 = vld [vmem:[#allocation5 + $0x58] sm:$0xff]  ;;  %v403_v56 = vpack.c.bf16 %v83_v49, %v82_v48  ;;  %v70_v57 = vld [vmem:[#allocation5 + $0xe0] sm:$0xff]  ;;  %v71_v58 = vld [vmem:[#allocation5 + $0xe8] sm:$0xff]  ;;  %v95_v18 = vrot.slane %v41_v50, %v94_v12  ;;  %v103_v19 = vrot.slane %v41_v50, %v102_v16 }
  0x34   :  { %369 = vmatpush3.bf16.msra.mxu0 %v368_v30  ;;  %v84_v59 = vld [vmem:[#allocation5 + $0x150] sm:$0xff]  ;;  %v85_v60 = vld [vmem:[#allocation5 + $0x158] sm:$0xff]  ;;  %v380_v61 = vpack.c.bf16 %v53_v55, %v52_v54  ;;  %v382_v62 = vpack.c.bf16 %v71_v58, %v70_v57  ;;  %v54_v63 = vld [vmem:[#allocation5 + $0x60] sm:$0xff] }
  0x35   :  { %371 = vmatprep.subr.bf16.mxu0 %v370_v32  ;;  %398 = vmatpush3.bf16.msra.mxu1 %v397_v35  ;;  %v55_v1 = vld [vmem:[#allocation5 + $0x68] sm:$0xff]  ;;  %v406_v2 = vpack.c.bf16 %v85_v60, %v84_v59  ;;  %v72_v3 = vld [vmem:[#allocation5 + $0xf0] sm:$0xff]  ;;  %v73_v4 = vld [vmem:[#allocation5 + $0xf8] sm:$0xff] }
  0x36   :  { %399 = vmatprep.subr.bf16.mxu1 %v502_v0  ;;  %171 = vmatprep.mubr.f32.mxu0 %v99_v52  ;;  %v86_v5 = vld [vmem:[#allocation5 + $0x160] sm:$0xff]  ;;  %v87_v6 = vld [vmem:[#allocation5 + $0x168] sm:$0xff]  ;;  %v384_v7 = vpack.c.bf16 %v55_v1, %v54_v63  ;;  %v386_v8 = vpack.c.bf16 %v73_v4, %v72_v3  ;;  %v56_v9 = vld [vmem:[#allocation5 + $0x70] sm:$0xff] }
  0x37   :  { %v57_v10 = vld [vmem:[#allocation5 + $0x78] sm:$0xff]  ;;  %v409_v11 = vpack.c.bf16 %v87_v6, %v86_v5  ;;  %v88_v13 = vld [vmem:[#allocation5 + $0x170] sm:$0xff] }
  0x38   :  { %373 = vmatpush3.bf16.msra.mxu0 %v372_v40  ;;  %v89_v14 = vld [vmem:[#allocation5 + $0x178] sm:$0xff]  ;;  %v388_v15 = vpack.c.bf16 %v57_v10, %v56_v9 }
  0x39   :  { %375 = vmatprep.subr.bf16.mxu0 %v374_v42  ;;  %401 = vmatpush3.bf16.msra.mxu1 %v400_v45  ;;  %v412_v17 = vpack.c.bf16 %v89_v14, %v88_v13  ;;  %v90_v22 = vld [vmem:[%s587_s2] sm:$0x1] }
  0x3a   :  { %402 = vmatprep.subr.bf16.mxu1 %v502_v0 }
  0x3c   :  { %377 = vmatpush3.bf16.msra.mxu0 %v376_v51 }
  0x3d   :  { %379 = vmatprep.subr.bf16.mxu0 %v378_v53  ;;  %404 = vmatpush3.bf16.msra.mxu1 %v403_v56 }
  0x3e   :  { %405 = vmatprep.subr.bf16.mxu1 %v502_v0 }
  0x40   :  { %381 = vmatpush3.bf16.msra.mxu0 %v380_v61 }
  0x41   :  { %383 = vmatprep.subr.bf16.mxu0 %v382_v62  ;;  %407 = vmatpush3.bf16.msra.mxu1 %v406_v2 }
  0x42   :  { %408 = vmatprep.subr.bf16.mxu1 %v502_v0 }
  0x44   :  { %385 = vmatpush3.bf16.msra.mxu0 %v384_v7 }
  0x45   :  { %387 = vmatprep.subr.bf16.mxu0 %v386_v8  ;;  %410 = vmatpush3.bf16.msra.mxu1 %v409_v11 }
  0x46   :  { %411 = vmatprep.subr.bf16.mxu1 %v502_v0 }
  0x48   :  { %389 = vmatpush3.bf16.msra.mxu0 %v388_v15 }
  0x49   :  { %413 = vmatpush3.bf16.msra.mxu1 %v412_v17 }
  0x4b   :  { %172 = vmatmul.mubr.f32.vlgmr.msra.gmra.mrb[0].mxu0 %v95_v18 }
  0x4c   :  { %356 = vmatmul.mubr.f32.vlgmr.msra.gmra.mrb[0].mxu1 %v103_v19 }
 0x11e   :  { %v303_v20 = vpop.f32.mrb[0].mxu0 }
 0x11f   :  { %v304_v21 = vpop.f32.mrb[1].mxu0  ;;  %v243_v24 = vpop.f32.mrb[0].mxu1 }
 0x120   :  { %v305_v23 = vadd.f32 %v304_v21, %v303_v20  ;;  %v357_v25 = vpop.f32.mrb[1].mxu1 }
 0x122   :  { %v174_v26 = vadd.f32 %v305_v23, %v90_v22 }
 0x124   :  { %v244_v27 = vadd.f32 %v243_v24, %v174_v26 }
 0x126   :  { %v270_v28 = vmul.f32 -1.442695, %v244_v27 }
 0x128   :  { %422 = vpow2.f32 %v270_v28 }
 0x132   :  { %v423_v29 = vpop.eup %422 }
 0x133   :  { %v250_v0 = vadd.f32 1.0, %v423_v29 }
 0x135   :  { %424 = vrcp.f32 %v250_v0 }
 0x13f   :  { %v425_v30 = vpop.eup %424 }
 0x140   :  { %253 = vst [vmem:[#allocation7] sm:$0x1] %v425_v30 }
 0x141   :  { %481 = shalt.err (!%p478_p6)
}
 0x142   :  { %s482_s17 = scalar_lea.hbm %s588_s3, 16 }
 0x143   :  { %p483_p7 = scmp.ne.s32.totalorder %s588_s3, %s482_s17  ;;  %p486_p8 = scmp.lt.u32.totalorder %s482_s17, %s588_s3 }
 0x145   :  { %p488_p9 = pnand %p486_p8, %p483_p7 }
 0x147   :  { %491 = shalt.err (!%p488_p9)
}
 0x148   :  { %263 = dma.vmem_to_hbm [thread:$0]  %s261_s13, 16, %s588_s3, [#allocation4]  }
 0x149   :  { %496 = dma.done.wait [#allocation4], 16  }
 0x14a   :  { %497 = vsyncadd [#allocation4], 4294967280 }
 0x14b   :  { %267 = vsyncpa [#allocation3], 1 }
 0x14c   :  { %268 = vsyncpa [#allocation6], 1 }
 0x14d   :  { %269 = vsyncpa [#allocation4], 1 }

</bundles_post_ra>
